<compile_context>
chip_gen: v6e
topology: v6e:2x2x1
jax: 0.10.0
libtpu: 0.0.40
codegen_flags: <defaults>
</compile_context>

<pallas_src>
import functools

import jax
import jax.numpy as jnp
from jax.experimental import pallas as pl
from jax.experimental.pallas import tpu as pltpu


def _round_up(x, m):
    return ((x + m - 1) // m) * m


def _default_bf16_epilogue():
    """bf16 VALU exists on v6e/v7x; keep f32 epilogue on v5e and older (or unknown)."""
    try:
        kind = jax.devices()[0].device_kind.lower()
    except Exception:
        return False
    return any(tag in kind for tag in ("v6", "v7", "tpu7"))


def _actor_kernel(x_ref,
                  w1_ref, b1_ref,
                  w2_ref, b2_ref,
                  wh_ref, bh_ref,
                  out_ref,
                  *, split, bf16_epilogue):
    """Fused MLP: fc1+relu -> fc2+relu -> packed head -> one lane-dense bf16 store.

    Output lanes [0, split) carry tanh(mean head); lanes [split, 2*split) carry
    exp(clip(log_std head, -20, 2)); remaining padded lanes are harmless (std=1)
    and sliced away by the wrapper.
    """
    cdt = w1_ref.dtype  # bf16 MXU operand dtype; accumulation is always f32.

    def bias_relu(acc_f32, b_ref):
        if bf16_epilogue:
            # bf16 VALU path (v6e/v7x): halves VPU work / vreg pressure.
            return jnp.maximum(acc_f32.astype(cdt) + b_ref[...].astype(cdt), 0.0)
        # f32 epilogue (v5e has no bf16 VALU); cast only for the next MXU push.
        return jnp.maximum(acc_f32 + b_ref[...], 0.0).astype(cdt)

    x = x_ref[...].astype(cdt)  # in-kernel cast: hidden under the MXU.

    h1 = bias_relu(jnp.dot(x, w1_ref[...], preferred_element_type=jnp.float32),
                   b1_ref)
    h2 = bias_relu(jnp.dot(h1, w2_ref[...], preferred_element_type=jnp.float32),
                   b2_ref)

    # Fused heads: one lane-dense matmul over the packed (256, OUT_W) matrix.
    h = jnp.dot(h2, wh_ref[...], preferred_element_type=jnp.float32) + bh_ref[...]

    lane = jax.lax.broadcasted_iota(jnp.int32, h.shape, 1)
    mean_part = jnp.tanh(h)
    std_part = jnp.exp(jnp.clip(h, -20.0, 2.0))     # clip first -> exp <= e^2, no overflow
    out_ref[...] = jnp.where(lane < split, mean_part, std_part).astype(out_ref.dtype)
    # TODO(synk): for the B~8 acting path, fuse Normal sampling here
    # (pltpu.prng_seed + pltpu.stateful_normal -> action = mean + std*z) to kill
    # the second launch + HBM round trip; torch.distributions.Normal itself has
    # no Pallas equivalent, so the kernel returns its parameters.


def pack_params(params, compute_dtype=jnp.bfloat16):
    """Fuse mean/log_std head weights into one lane-dense matrix; cast MXU operands.

    If 2*n_actions <= 128 both heads share a single 128-lane slab (mean in
    lanes [0, n), log_std in lanes [n, 2n)); otherwise fall back to a
    2*round_up(n, 128)-lane layout with the same masked-select epilogue.
    """
    w1, b1, w2, b2, wm, bm, ws, bs = params
    h2_dim = w2.shape[1]
    n = wm.shape[1]

    if 2 * n <= 128:
        out_w, split = 128, n
    else:
        hp = _round_up(n, 128)
        out_w, split = 2 * hp, hp

    wh = jnp.zeros((h2_dim, out_w), jnp.float32)
    wh = wh.at[:, :n].set(wm).at[:, split:split + n].set(ws)
    bh = jnp.zeros((1, out_w), jnp.float32)
    bh = bh.at[:, :n].set(bm[0]).at[:, split:split + n].set(bs[0])
    # Padded log_std lanes give exp(clip(0)) = 1 and are dropped by the slice
    # in actor_forward, so they are harmless.

    return dict(
        w1=w1.astype(compute_dtype), b1=b1.astype(jnp.float32),
        w2=w2.astype(compute_dtype), b2=b2.astype(jnp.float32),
        wh=wh.astype(compute_dtype), bh=bh.astype(jnp.float32),
        n_actions=n, split=split,
    )


@functools.partial(jax.jit, static_argnames=("split", "tb_max", "bf16_epilogue"))
def _actor_forward_packed(state, w1, b1, w2, b2, wh, bh,
                          *, split, tb_max=1024, bf16_epilogue=False):
    B, D = state.shape
    out_w = wh.shape[1]
    tb_max = max(16, int(tb_max))

    # Batch tiling: pad to a multiple of 16 (bf16 sublane packing); prefer a
    # grid with >= 2 steps so both v7x TensorCores get work.
    b16 = max(16, _round_up(B, 16))
    if b16 >= 32:
        tb = min(tb_max, _round_up(-(-b16 // 2), 16))
    else:
        tb = b16
    b_pad = _round_up(b16, tb)

    x = state.astype(jnp.float32)           # kernel casts to bf16 internally
    if b_pad != B:
        x = jnp.pad(x, ((0, b_pad - B), (0, 0)))   # explicit zero-pad, no OOB reads

    grid = (b_pad // tb,)
    weight_spec = lambda a: pl.BlockSpec(a.shape, lambda i: (0, 0))  # VMEM-resident

    kernel = functools.partial(_actor_kernel, split=split,
                               bf16_epilogue=bf16_epilogue)

    packed_out = pl.pallas_call(
        kernel,
        out_shape=jax.ShapeDtypeStruct((b_pad, out_w), jnp.bfloat16),
        grid=grid,
        in_specs=[
            pl.BlockSpec((tb, D), lambda i: (i, 0)),   # state tile
            weight_spec(w1), weight_spec(b1),
            weight_spec(w2), weight_spec(b2),
            weight_spec(wh), weight_spec(bh),
        ],
        out_specs=pl.BlockSpec((tb, out_w), lambda i: (i, 0)),
        compiler_params=pltpu.CompilerParams(
            dimension_semantics=("parallel",),
            vmem_limit_bytes=16 << 20,
        ),
    )(x, w1, b1, w2, b2, wh, bh)
    return packed_out


def actor_forward(state, packed, *, tb_max=1024, bf16_epilogue=None):
    """Full actor MLP. Returns (mean, std) — the parameters of Normal(mean, std)."""
    if bf16_epilogue is None:
        bf16_epilogue = _default_bf16_epilogue()
    out = _actor_forward_packed(
        state,
        packed["w1"], packed["b1"], packed["w2"], packed["b2"],
        packed["wh"], packed["bh"],
        split=int(packed["split"]), tb_max=tb_max, bf16_epilogue=bool(bf16_epilogue))
    B = state.shape[0]
    n, s = packed["n_actions"], packed["split"]
    mean = out[:B, :n].astype(jnp.float32)
    std = out[:B, s:s + n].astype(jnp.float32)
    return mean, std


def init_params(key, input_dim, fc1_dims, fc2_dims, n_actions):
    """Deterministic synthetic init (PyTorch-Linear-like uniform fan-in bounds)."""
    ks = jax.random.split(key, 8)

    def linear(kw, kb, fan_in, fan_out):
        bound = 1.0 / jnp.sqrt(jnp.float32(fan_in))
        w = jax.random.uniform(kw, (fan_in, fan_out), jnp.float32, -bound, bound)
        b = jax.random.uniform(kb, (1, fan_out), jnp.float32, -bound, bound)
        return w, b

    w1, b1 = linear(ks[0], ks[1], input_dim, fc1_dims)
    w2, b2 = linear(ks[2], ks[3], fc1_dims, fc2_dims)
    wm, bm = linear(ks[4], ks[5], fc2_dims, n_actions)
    ws, bs = linear(ks[6], ks[7], fc2_dims, n_actions)
    return (w1, b1, w2, b2, wm, bm, ws, bs)


def reference_forward(state, params, compute_dtype=jnp.float32):
    """Pure-JAX reference; compute_dtype mimics the kernel's MXU-operand cast."""
    w1, b1, w2, b2, wm, bm, ws, bs = params
    c = lambda a: a.astype(compute_dtype)
    h1 = jax.nn.relu(jnp.dot(c(state), c(w1), preferred_element_type=jnp.float32) + b1)
    h2 = jax.nn.relu(jnp.dot(c(h1), c(w2), preferred_element_type=jnp.float32) + b2)
    mean = jnp.tanh(jnp.dot(c(h2), c(wm), preferred_element_type=jnp.float32) + bm)
    log_std = jnp.clip(jnp.dot(c(h2), c(ws), preferred_element_type=jnp.float32) + bs,
                       -20.0, 2.0)
    return mean, jnp.exp(log_std)


if __name__ == "__main__":
    # Small shapes consistent with the module: state=(B, input_dim), hidden=256.
    B = 8
    INPUT_DIM = 32
    FC1_DIMS = 256
    FC2_DIMS = 256
    N_ACTIONS = 4

    key = jax.random.PRNGKey(0)
    k_state, k_params = jax.random.split(key)

    state = jax.random.normal(k_state, (B, INPUT_DIM), jnp.float32)
    params = init_params(k_params, INPUT_DIM, FC1_DIMS, FC2_DIMS, N_ACTIONS)
    packed = pack_params(params, compute_dtype=jnp.bfloat16)

    mean, std = actor_forward(state, packed)
    jax.block_until_ready((mean, std))

    assert mean.shape == (B, N_ACTIONS) and std.shape == (B, N_ACTIONS)
    assert bool(jnp.all(jnp.isfinite(mean))) and bool(jnp.all(std > 0.0))

    # Reference with the same bf16 MXU-operand cast (bf16 output rounding +
    # possible bf16 epilogue on v6e/v7x -> slightly looser than pure-f32 tol).
    ref_mean_bf16, ref_std_bf16 = reference_forward(state, params, jnp.bfloat16)
    assert jnp.allclose(mean, ref_mean_bf16, atol=3e-2, rtol=3e-2)
    assert jnp.allclose(std, ref_std_bf16, atol=3e-2, rtol=3e-2)

    # Loose sanity check against the full-f32 reference (bf16 quantization only).
    ref_mean_f32, ref_std_f32 = reference_forward(state, params, jnp.float32)
    assert jnp.max(jnp.abs(mean - ref_mean_f32)) < 1e-1
    assert jnp.max(jnp.abs(std - ref_std_f32) / jnp.maximum(ref_std_f32, 1e-3)) < 1e-1

    # Exercise a multi-tile / multi-step grid path as well (B not a tile multiple).
    big_state = jax.random.normal(jax.random.PRNGKey(1), (100, INPUT_DIM), jnp.float32)
    mean_b, std_b = actor_forward(big_state, packed, tb_max=1024)
    jax.block_until_ready((mean_b, std_b))
    ref_mb, ref_sb = reference_forward(big_state, params, jnp.bfloat16)
    assert mean_b.shape == (100, N_ACTIONS) and std_b.shape == (100, N_ACTIONS)
    assert jnp.allclose(mean_b, ref_mb, atol=3e-2, rtol=3e-2)
    assert jnp.allclose(std_b, ref_sb, atol=3e-2, rtol=3e-2)

    print("KERNEL_OK")
</pallas_src>

<mosaic_0001>
module attributes {stable_mosaic.version = 11 : i64} {
  func.func @_actor_kernel(%arg0: i32, %arg1: memref<16x32xf32, #tpu.memory_space<vmem>>, %arg2: memref<32x256xbf16, #tpu.memory_space<vmem>>, %arg3: memref<1x256xf32, #tpu.memory_space<vmem>>, %arg4: memref<256x256xbf16, #tpu.memory_space<vmem>>, %arg5: memref<1x256xf32, #tpu.memory_space<vmem>>, %arg6: memref<256x128xbf16, #tpu.memory_space<vmem>>, %arg7: memref<1x128xf32, #tpu.memory_space<vmem>>, %arg8: memref<16x128xbf16, #tpu.memory_space<vmem>>) attributes {dimension_semantics = [#tpu.dimension_semantics<parallel>], iteration_bounds = array<i64: 1>, scalar_prefetch = 0 : i64, scratch_operands = 0 : i64, tpu.core_type = #tpu.core_type<tc>, window_params = [{transform_indices = @transform_0, window_bounds = array<i64: 16, 32>}, {pipeline_mode = #tpu.pipeline_mode<synchronous>, transform_indices = @transform_1, window_bounds = array<i64: 32, 256>}, {pipeline_mode = #tpu.pipeline_mode<synchronous>, transform_indices = @transform_2, window_bounds = array<i64: 1, 256>}, {pipeline_mode = #tpu.pipeline_mode<synchronous>, transform_indices = @transform_3, window_bounds = array<i64: 256, 256>}, {pipeline_mode = #tpu.pipeline_mode<synchronous>, transform_indices = @transform_4, window_bounds = array<i64: 1, 256>}, {pipeline_mode = #tpu.pipeline_mode<synchronous>, transform_indices = @transform_5, window_bounds = array<i64: 256, 128>}, {pipeline_mode = #tpu.pipeline_mode<synchronous>, transform_indices = @transform_6, window_bounds = array<i64: 1, 128>}, {transform_indices = @transform_7, window_bounds = array<i64: 16, 128>}]} {
    %c0 = arith.constant 0 : index
    %c0_0 = arith.constant 0 : index
    %0 = vector.load %arg1[%c0, %c0_0] : memref<16x32xf32, #tpu.memory_space<vmem>>, vector<16x32xf32>
    %1 = arith.truncf %0 : vector<16x32xf32> to vector<16x32xbf16>
    %c0_1 = arith.constant 0 : index
    %c0_2 = arith.constant 0 : index
    %2 = vector.load %arg2[%c0_1, %c0_2] : memref<32x256xbf16, #tpu.memory_space<vmem>>, vector<32x256xbf16>
    %cst = arith.constant dense<0.000000e+00> : vector<16x256xf32>
    %3 = tpu.matmul %1, %2, %cst {dimension_numbers = #tpu.dot_dimension_numbers<[1], [0], [0], [1], [0, 0, 1, 1], [], []>} : vector<16x32xbf16>, vector<32x256xbf16>, vector<16x256xf32> -> vector<16x256xf32>
    %c0_3 = arith.constant 0 : index
    %c0_4 = arith.constant 0 : index
    %4 = vector.load %arg3[%c0_3, %c0_4] : memref<1x256xf32, #tpu.memory_space<vmem>>, vector<1x256xf32>
    %5 = vector.broadcast %4 : vector<1x256xf32> to vector<16x256xf32>
    %6 = arith.addf %3, %5 : vector<16x256xf32>
    %cst_5 = arith.constant 0.000000e+00 : f32
    %7 = vector.broadcast %cst_5 : f32 to vector<16x256xf32>
    %8 = arith.maximumf %6, %7 : vector<16x256xf32>
    %9 = arith.truncf %8 : vector<16x256xf32> to vector<16x256xbf16>
    %c0_6 = arith.constant 0 : index
    %c0_7 = arith.constant 0 : index
    %10 = vector.load %arg4[%c0_6, %c0_7] : memref<256x256xbf16, #tpu.memory_space<vmem>>, vector<256x256xbf16>
    %cst_8 = arith.constant dense<0.000000e+00> : vector<16x256xf32>
    %11 = tpu.matmul %9, %10, %cst_8 {dimension_numbers = #tpu.dot_dimension_numbers<[1], [0], [0], [1], [0, 0, 1, 1], [], []>} : vector<16x256xbf16>, vector<256x256xbf16>, vector<16x256xf32> -> vector<16x256xf32>
    %c0_9 = arith.constant 0 : index
    %c0_10 = arith.constant 0 : index
    %12 = vector.load %arg5[%c0_9, %c0_10] : memref<1x256xf32, #tpu.memory_space<vmem>>, vector<1x256xf32>
    %13 = vector.broadcast %12 : vector<1x256xf32> to vector<16x256xf32>
    %14 = arith.addf %11, %13 : vector<16x256xf32>
    %cst_11 = arith.constant 0.000000e+00 : f32
    %15 = vector.broadcast %cst_11 : f32 to vector<16x256xf32>
    %16 = arith.maximumf %14, %15 : vector<16x256xf32>
    %17 = arith.truncf %16 : vector<16x256xf32> to vector<16x256xbf16>
    %c0_12 = arith.constant 0 : index
    %c0_13 = arith.constant 0 : index
    %18 = vector.load %arg6[%c0_12, %c0_13] : memref<256x128xbf16, #tpu.memory_space<vmem>>, vector<256x128xbf16>
    %cst_14 = arith.constant dense<0.000000e+00> : vector<16x128xf32>
    %19 = tpu.matmul %17, %18, %cst_14 {dimension_numbers = #tpu.dot_dimension_numbers<[1], [0], [0], [1], [0, 0, 1, 1], [], []>} : vector<16x256xbf16>, vector<256x128xbf16>, vector<16x128xf32> -> vector<16x128xf32>
    %c0_15 = arith.constant 0 : index
    %c0_16 = arith.constant 0 : index
    %20 = vector.load %arg7[%c0_15, %c0_16] : memref<1x128xf32, #tpu.memory_space<vmem>>, vector<1x128xf32>
    %21 = vector.broadcast %20 : vector<1x128xf32> to vector<16x128xf32>
    %22 = arith.addf %19, %21 : vector<16x128xf32>
    %23 = tpu.iota {dimensions = array<i32: 1>} : vector<16x128xi32>
    %24 = math.tanh %22 : vector<16x128xf32>
    %cst_17 = arith.constant -2.000000e+01 : f32
    %cst_18 = arith.constant 2.000000e+00 : f32
    %25 = vector.broadcast %cst_17 : f32 to vector<16x128xf32>
    %26 = arith.maximumf %25, %22 : vector<16x128xf32>
    %27 = vector.broadcast %cst_18 : f32 to vector<16x128xf32>
    %28 = arith.minimumf %27, %26 : vector<16x128xf32>
    %29 = math.exp %28 : vector<16x128xf32>
    %c4_i32 = arith.constant 4 : i32
    %30 = vector.broadcast %c4_i32 : i32 to vector<16x128xi32>
    %31 = arith.cmpi slt, %23, %30 : vector<16x128xi32>
    %32 = arith.select %31, %24, %29 : vector<16x128xi1>, vector<16x128xf32>
    %33 = arith.truncf %32 : vector<16x128xf32> to vector<16x128xbf16>
    %c0_19 = arith.constant 0 : index
    %c0_20 = arith.constant 0 : index
    %34 = vector.load %arg8[%c0_19, %c0_20] : memref<16x128xbf16, #tpu.memory_space<vmem>>, vector<16x128xbf16>
    tpu.vector_store %arg8[%c0_19, %c0_20], %33 {strides = array<i32>} : memref<16x128xbf16, #tpu.memory_space<vmem>>, vector<16x128xbf16>,
    return
  }
  func.func @transform_0(%arg0: i32) -> (i32, i32) {
    %c0_i32 = arith.constant 0 : i32
    %c0_i32_0 = arith.constant 0 : i32
    return %arg0, %c0_i32 : i32, i32
  }
  func.func @transform_1(%arg0: i32) -> (i32, i32) {
    %c0_i32 = arith.constant 0 : i32
    %c0_i32_0 = arith.constant 0 : i32
    %c0_i32_1 = arith.constant 0 : i32
    return %c0_i32, %c0_i32_0 : i32, i32
  }
  func.func @transform_2(%arg0: i32) -> (i32, i32) {
    %c0_i32 = arith.constant 0 : i32
    %c0_i32_0 = arith.constant 0 : i32
    %c0_i32_1 = arith.constant 0 : i32
    return %c0_i32, %c0_i32_0 : i32, i32
  }
  func.func @transform_3(%arg0: i32) -> (i32, i32) {
    %c0_i32 = arith.constant 0 : i32
    %c0_i32_0 = arith.constant 0 : i32
    %c0_i32_1 = arith.constant 0 : i32
    return %c0_i32, %c0_i32_0 : i32, i32
  }
  func.func @transform_4(%arg0: i32) -> (i32, i32) {
    %c0_i32 = arith.constant 0 : i32
    %c0_i32_0 = arith.constant 0 : i32
    %c0_i32_1 = arith.constant 0 : i32
    return %c0_i32, %c0_i32_0 : i32, i32
  }
  func.func @transform_5(%arg0: i32) -> (i32, i32) {
    %c0_i32 = arith.constant 0 : i32
    %c0_i32_0 = arith.constant 0 : i32
    %c0_i32_1 = arith.constant 0 : i32
    return %c0_i32, %c0_i32_0 : i32, i32
  }
  func.func @transform_6(%arg0: i32) -> (i32, i32) {
    %c0_i32 = arith.constant 0 : i32
    %c0_i32_0 = arith.constant 0 : i32
    %c0_i32_1 = arith.constant 0 : i32
    return %c0_i32, %c0_i32_0 : i32, i32
  }
  func.func @transform_7(%arg0: i32) -> (i32, i32) {
    %c0_i32 = arith.constant 0 : i32
    %c0_i32_0 = arith.constant 0 : i32
    return %arg0, %c0_i32 : i32, i32
  }
}

</mosaic_0001>

<bundles_post_ra>
// kernel: _actor_forward_packed.1
= control target key start
LH: loop header
LB: loop body
LE: loop exit
PB: predicated region body
PF: predicated region fallthrough
CT: control target
= control target key end

     0   :  { %12 = vsyncpa [#allocation3], 0  ;;  %s975_s0 = inlined_call_operand.vmem [shape: f32[16,32], index: 0, kind: input, shape index: {}]   ;;  %s976_s1 = inlined_call_operand.hbm [shape: bf16[32,256], index: 1, kind: input, shape index: {}]   ;;  %s977_s2 = inlined_call_operand.vmem [shape: f32[1,256], index: 2, kind: input, shape index: {}]   ;;  %s978_s3 = inlined_call_operand.hbm [shape: bf16[256,256], index: 3, kind: input, shape index: {}]   ;;  %s979_s4 = inlined_call_operand.vmem [shape: f32[1,256], index: 4, kind: input, shape index: {}]   ;;  %s980_s5 = inlined_call_operand.hbm [shape: bf16[256,128], index: 5, kind: input, shape index: {}]   ;;  %s981_s6 = inlined_call_operand.vmem [shape: f32[1,128], index: 6, kind: input, shape index: {}]   ;;  %s982_s7 = inlined_call_operand.hbm [shape: bf16[16,128], index: 7, kind: output, shape index: {}]  }
   0x1   :  { %13 = vsyncpa [#allocation6], 0 }
   0x2   :  { %14 = vsyncpa [#allocation4], 0  ;;  %s891_s24 = smov [#allocation5]   ;;  %s892_s26 = smov [#allocation2]  }
   0x3   :  { %s36_s25 = sshll.u32 %s891_s24, 4  ;;  %s22_s27 = sshll.u32 %s892_s26, 4  ;;  %s37_s25 = int_to_ptr.vmem [resolvable:$true] %s36_s25  ;;  %s23_s27 = int_to_ptr.vmem [resolvable:$true] %s22_s27 }
   0x4   :  { %s813_s28 = scalar_lea.vmem %s37_s25, 4096  ;;  %p818_p1 = scmp.lt.s32.totalorder %s37_s25, %s37_s25 }
   0x5   :  { %p814_p0 = scmp.ne.s32.totalorder %s37_s25, %s813_s28  ;;  %p819_p2 = scmp.lt.s32.totalorder %s813_s28, %s813_s28 }
   0x7   :  { %p820_p3 = por %p819_p2, %p818_p1 }
   0x9   :  { %p821_p4 = pnand %p820_p3, %p814_p0 }
   0xb   :  { %824 = shalt.err (!%p821_p4)
}
   0xc   :  { %s893_s29 = smov 128   ;;  %s894_s30 = smov 8  }
   0xd   :  { %42 = dma.hbm_to_vmem [thread:$0]  %s978_s3, 4096, %s37_s25, [#allocation6], %s893_s29, %s893_s29, %s894_s30  }
   0xe   :  { %s833_s10 = scalar_lea.vmem %s23_s27, 512  ;;  %p838_p6 = scmp.lt.s32.totalorder %s23_s27, %s23_s27 }
   0xf   :  { %p834_p5 = scmp.ne.s32.totalorder %s23_s27, %s833_s10  ;;  %p839_p7 = scmp.lt.s32.totalorder %s833_s10, %s833_s10 }
  0x11   :  { %p840_p8 = por %p839_p7, %p838_p6 }
  0x13   :  { %p841_p9 = pnand %p840_p8, %p834_p5 }
  0x15   :  { %844 = shalt.err (!%p841_p9)
}
  0x16   :  { %28 = dma.hbm_to_vmem [thread:$0]  %s976_s1, 512, %s23_s27, [#allocation3], %s893_s29, %s893_s29, %s894_s30  }
  0x17   :  { %s895_s13 = smov [#allocation7]  }
  0x18   :  { %s50_s14 = sshll.u32 %s895_s13, 4  ;;  %s51_s14 = int_to_ptr.vmem [resolvable:$true] %s50_s14 }
  0x19   :  { %s853_s15 = scalar_lea.vmem %s51_s14, 2048  ;;  %p858_p11 = scmp.lt.s32.totalorder %s51_s14, %s51_s14 }
  0x1a   :  { %p854_p10 = scmp.ne.s32.totalorder %s51_s14, %s853_s15  ;;  %p859_p12 = scmp.lt.s32.totalorder %s853_s15, %s853_s15 }
  0x1c   :  { %p860_p13 = por %p859_p12, %p858_p11 }
  0x1e   :  { %p861_p0 = pnand %p860_p13, %p854_p10 }
  0x20   :  { %864 = shalt.err (!%p861_p0)
}
  0x21   :  { %s896_s3 = smov 64   ;;  %s897_s16 = smov 4  }
  0x22   :  { %56 = dma.hbm_to_vmem [thread:$0]  %s980_s5, 2048, %s51_s14, [#allocation6], %s896_s3, %s896_s3, %s897_s16  }
  0x23   :  { %885 = dma.done.wait [#allocation3], 512  }
  0x24   :  { %886 = vsyncadd [#allocation3], 4294966784 }
  0x25   :  { %887 = dma.done.wait [#allocation6], 6144  }
  0x26   :  { %888 = vsyncadd [#allocation6], 4294961152  ;;  %v898_v0 = vmov 0   ;;  %v727_v1 = vld [vmem:[#allocation2 + $0x14] ss:$8 sps:$4 sm:$0xff]   ;;  %v69_v5 = vld [vmem:[%s975_s0] sm:$0xff]  ;;  %v78_v50 = vlaneseq }
  0x27   :  { %144 = vmatprep.mubr.bf16.mxu0 %v898_v0  ;;  %v729_v2 = vld [vmem:[#allocation2 + $0x10] ss:$8 sps:$4 sm:$0xff]   ;;  %124 = vmatprep.subr.bf16.mxu0 %v727_v1  ;;  %v730_v3 = vld [vmem:[#allocation2 + $0x4] ss:$8 sps:$4 sm:$0xff]   ;;  %v732_v4 = vld [vmem:[#allocation2] ss:$8 sps:$4 sm:$0xff]  }
  0x28   :  { %125 = vmatpush1.bf16.msra.mxu0 %v729_v2  ;;  %v70_v6 = vld [vmem:[%s975_s0 + $0x8] sm:$0xff]  ;;  %v733_v7 = vld [vmem:[#allocation5 + $0x74] ss:$8 sps:$4 sm:$0xff]   ;;  %v735_v8 = vld [vmem:[#allocation5 + $0x70] ss:$8 sps:$4 sm:$0xff]   ;;  %vm108_vm0 = vcmask 261120  }
  0x29   :  { %126 = vmatprep.subr.bf16.mxu0 %v730_v3  ;;  %v736_v9 = vld [vmem:[#allocation5 + $0x64] ss:$8 sps:$4 sm:$0xff]   ;;  %v71_v10 = vpack.c.bf16 %v70_v6, %v69_v5  ;;  %365 = vmatprep.subr.bf16.mxu1 %v733_v7  ;;  %v738_v11 = vld [vmem:[#allocation5 + $0x60] ss:$8 sps:$4 sm:$0xff]   ;;  %v739_v12 = vld [vmem:[#allocation5 + $0x54] ss:$8 sps:$4 sm:$0xff]  }
  0x2a   :  { %366 = vmatpush1.bf16.msra.mxu1 %v735_v8  ;;  %v741_v13 = vld [vmem:[#allocation5 + $0x50] ss:$8 sps:$4 sm:$0xff]   ;;  %v742_v14 = vld [vmem:[#allocation5 + $0x44] ss:$8 sps:$4 sm:$0xff]   ;;  %v744_v15 = vld [vmem:[#allocation5 + $0x40] ss:$8 sps:$4 sm:$0xff]  }
  0x2b   :  { %367 = vmatprep.subr.bf16.mxu1 %v736_v9  ;;  %v745_v16 = vld [vmem:[#allocation5 + $0x34] ss:$8 sps:$4 sm:$0xff]   ;;  %v747_v17 = vld [vmem:[#allocation5 + $0x30] ss:$8 sps:$4 sm:$0xff]   ;;  %v748_v18 = vld [vmem:[#allocation5 + $0x24] ss:$8 sps:$4 sm:$0xff]  }
  0x2c   :  { %127 = vmatpush1.bf16.msra.mxu0 %v732_v4  ;;  %v750_v19 = vld [vmem:[#allocation5 + $0x20] ss:$8 sps:$4 sm:$0xff]   ;;  %v751_v20 = vld [vmem:[#allocation5 + $0x14] ss:$8 sps:$4 sm:$0xff]   ;;  %v753_v21 = vld [vmem:[#allocation5 + $0x10] ss:$8 sps:$4 sm:$0xff]  }
  0x2d   :  { %v754_v22 = vld [vmem:[#allocation5 + $0x4] ss:$8 sps:$4 sm:$0xff]   ;;  %v756_v23 = vld [vmem:[#allocation5] ss:$8 sps:$4 sm:$0xff]   ;;  %v757_v24 = vld [vmem:[#allocation5 + $0xf4] ss:$8 sps:$4 sm:$0xff]  }
  0x2e   :  { %368 = vmatpush1.bf16.msra.mxu1 %v738_v11  ;;  %v759_v25 = vld [vmem:[#allocation5 + $0xf0] ss:$8 sps:$4 sm:$0xff]   ;;  %v760_v26 = vld [vmem:[#allocation5 + $0xe4] ss:$8 sps:$4 sm:$0xff]   ;;  %v762_v27 = vld [vmem:[#allocation5 + $0xe0] ss:$8 sps:$4 sm:$0xff]  }
  0x2f   :  { %637 = vmatmul.mubr.msk.bf16.vlgmr.msra.gmra.mxu0 %vm108_vm0, %v71_v10  ;;  %369 = vmatprep.subr.bf16.mxu1 %v739_v12  ;;  %v763_v28 = vld [vmem:[#allocation5 + $0xd4] ss:$8 sps:$4 sm:$0xff]   ;;  %v765_v29 = vld [vmem:[#allocation5 + $0xd0] ss:$8 sps:$4 sm:$0xff]   ;;  %v766_v30 = vld [vmem:[#allocation5 + $0xc4] ss:$8 sps:$4 sm:$0xff]  }
  0x30   :  { %v768_v31 = vld [vmem:[#allocation5 + $0xc0] ss:$8 sps:$4 sm:$0xff]   ;;  %v769_v32 = vld [vmem:[#allocation5 + $0xb4] ss:$8 sps:$4 sm:$0xff]   ;;  %v771_v33 = vld [vmem:[#allocation5 + $0xb0] ss:$8 sps:$4 sm:$0xff]  }
  0x31   :  { %v772_v34 = vld [vmem:[#allocation5 + $0xa4] ss:$8 sps:$4 sm:$0xff]   ;;  %v774_v35 = vld [vmem:[#allocation5 + $0xa0] ss:$8 sps:$4 sm:$0xff]   ;;  %v775_v36 = vld [vmem:[#allocation5 + $0x94] ss:$8 sps:$4 sm:$0xff]  }
  0x32   :  { %370 = vmatpush1.bf16.msra.mxu1 %v741_v13  ;;  %v777_v37 = vld [vmem:[#allocation5 + $0x90] ss:$8 sps:$4 sm:$0xff]   ;;  %v778_v38 = vld [vmem:[#allocation5 + $0x84] ss:$8 sps:$4 sm:$0xff]   ;;  %v780_v39 = vld [vmem:[#allocation5 + $0x80] ss:$8 sps:$4 sm:$0xff]  }
  0x33   :  { %371 = vmatprep.subr.bf16.mxu1 %v742_v14  ;;  %v781_v40 = vld [vmem:[#allocation7 + $0x78] sm:$0xff]   ;;  %v783_v42 = vld [vmem:[#allocation7 + $0x70] sm:$0xff]   ;;  %v785_v44 = vld [vmem:[#allocation7 + $0x68] sm:$0xff]   ;;  %v79_v51 = vshrl.u32 %v78_v50, 7 }
  0x34   :  { %v782_v41 = vld [vmem:[#allocation7 + $0x38] sm:$0xff]   ;;  %696 = vmatprep.subr.bf16.mxu0 %v781_v40  ;;  %v784_v43 = vld [vmem:[#allocation7 + $0x30] sm:$0xff]   ;;  %v786_v45 = vld [vmem:[#allocation7 + $0x28] sm:$0xff]  }
  0x35   :  { %697 = vmatpush3.bf16.msra.mxu0 %v782_v41  ;;  %v787_v46 = vld [vmem:[#allocation7 + $0x60] sm:$0xff]   ;;  %v789_v48 = vld [vmem:[#allocation7 + $0x58] sm:$0xff]   ;;  %v84_v52 = vsub.s32 1, %v79_v51  ;;  %v80_v53 = vsub.s32 0, %v79_v51  ;;  %v791_v7 = vld [vmem:[#allocation7 + $0x50] sm:$0xff]  }
  0x36   :  { %372 = vmatpush1.bf16.msra.mxu1 %v744_v15  ;;  %698 = vmatprep.subr.bf16.mxu0 %v783_v42  ;;  %v788_v47 = vld [vmem:[#allocation7 + $0x20] sm:$0xff]   ;;  %v790_v49 = vld [vmem:[#allocation7 + $0x18] sm:$0xff]   ;;  %v792_v8 = vld [vmem:[#allocation7 + $0x10] sm:$0xff]  }
  0x37   :  { %373 = vmatprep.subr.bf16.mxu1 %v745_v16  ;;  %v76_v54 = vld [vmem:[%s977_s2] sm:$0x3]  ;;  %v793_v9 = vld [vmem:[#allocation7 + $0x48] sm:$0xff]  }
  0x38   :  { %v85_v56 = vrot.slane %v76_v54, %v84_v52  ;;  %v81_v57 = vrot.slane %v76_v54, %v80_v53  ;;  %v794_v10 = vld [vmem:[#allocation7 + $0x8] sm:$0xff]   ;;  %v795_v11 = vld [vmem:[#allocation7 + $0x40] sm:$0xff]  }
  0x39   :  { %699 = vmatpush3.bf16.msra.mxu0 %v784_v43  ;;  %v796_v12 = vld [vmem:[#allocation7] sm:$0xff]  }
  0x3a   :  { %374 = vmatpush1.bf16.msra.mxu1 %v747_v17  ;;  %700 = vmatprep.subr.bf16.mxu0 %v785_v44  ;;  %v193_v13 = vld [vmem:[%s979_s4] sm:$0x3] }
  0x3b   :  { %375 = vmatprep.subr.bf16.mxu1 %v748_v18  ;;  %v202_v15 = vrot.slane %v193_v13, %v84_v52  ;;  %v198_v16 = vrot.slane %v193_v13, %v80_v53 }
  0x3d   :  { %701 = vmatpush3.bf16.msra.mxu0 %v786_v45  ;;  %v591_v45 = vand.u32 127, %v78_v50 }
  0x3e   :  { %376 = vmatpush1.bf16.msra.mxu1 %v750_v19  ;;  %702 = vmatprep.subr.bf16.mxu0 %v787_v46 }
  0x3f   :  { %377 = vmatprep.subr.bf16.mxu1 %v751_v20  ;;  %vm602_vm1 = vcmp.lt.s32.totalorder %v591_v45, 4 }
  0x41   :  { %703 = vmatpush3.bf16.msra.mxu0 %v788_v47 }
  0x42   :  { %378 = vmatpush1.bf16.msra.mxu1 %v753_v21  ;;  %704 = vmatprep.subr.bf16.mxu0 %v789_v48 }
  0x43   :  { %379 = vmatprep.subr.bf16.mxu1 %v754_v22 }
  0x45   :  { %705 = vmatpush3.bf16.msra.mxu0 %v790_v49 }
  0x46   :  { %380 = vmatpush1.bf16.msra.mxu1 %v756_v23  ;;  %706 = vmatprep.subr.bf16.mxu0 %v791_v7 }
  0x47   :  { %381 = vmatprep.subr.bf16.mxu1 %v757_v24 }
  0x49   :  { %707 = vmatpush3.bf16.msra.mxu0 %v792_v8 }
  0x4a   :  { %382 = vmatpush2.bf16.msra.mxu1 %v759_v25  ;;  %708 = vmatprep.subr.bf16.mxu0 %v793_v9 }
  0x4b   :  { %383 = vmatprep.subr.bf16.mxu1 %v760_v26 }
  0x4d   :  { %709 = vmatpush3.bf16.msra.mxu0 %v794_v10 }
  0x4e   :  { %384 = vmatpush2.bf16.msra.mxu1 %v762_v27  ;;  %710 = vmatprep.subr.bf16.mxu0 %v795_v11 }
  0x4f   :  { %385 = vmatprep.subr.bf16.mxu1 %v763_v28 }
  0x51   :  { %711 = vmatpush3.bf16.msra.mxu0 %v796_v12 }
  0x52   :  { %386 = vmatpush2.bf16.msra.mxu1 %v765_v29 }
  0x53   :  { %387 = vmatprep.subr.bf16.mxu1 %v766_v30 }
  0x56   :  { %388 = vmatpush2.bf16.msra.mxu1 %v768_v31  ;;  %v670_v31 = vld [vmem:[%s981_s6] ss:$0 sm:$0xff]  ;;  %s899_s6 = smov [#allocation8]  }
  0x57   :  { %389 = vmatprep.subr.bf16.mxu1 %v769_v32  ;;  %s620_s24 = sshll.u32 %s899_s6, 4  ;;  %s621_s24 = int_to_ptr.vmem [resolvable:$true] %s620_s24 }
  0x58   :  { %s865_s25 = scalar_lea.vmem %s621_s24, 128  ;;  %p870_p2 = scmp.lt.s32.totalorder %s621_s24, %s621_s24 }
  0x59   :  { %p866_p1 = scmp.ne.s32.totalorder %s621_s24, %s865_s25  ;;  %p871_p3 = scmp.lt.s32.totalorder %s865_s25, %s865_s25 }
  0x5a   :  { %390 = vmatpush2.bf16.msra.mxu1 %v771_v33 }
  0x5b   :  { %391 = vmatprep.subr.bf16.mxu1 %v772_v34  ;;  %p872_p4 = por %p871_p3, %p870_p2 }
  0x5d   :  { %p873_p5 = pnand %p872_p4, %p866_p1 }
  0x5e   :  { %392 = vmatpush2.bf16.msra.mxu1 %v774_v35 }
  0x5f   :  { %393 = vmatprep.subr.bf16.mxu1 %v775_v36 }
  0x62   :  { %394 = vmatpush2.bf16.msra.mxu1 %v777_v37 }
  0x63   :  { %395 = vmatprep.subr.bf16.mxu1 %v778_v38 }
  0x66   :  { %396 = vmatpush2.bf16.msra.mxu1 %v780_v39 }
  0xef   :  { %v146_v55 = vpop.f32.mrf.mxu0 }
  0xf0   :  { %v147_v62 = vadd.f32 %v146_v55, %v81_v57 }
  0xf1   :  { %v148_v58 = vpop.f32.mrf.mxu0 }
  0xf2   :  { %v149_v60 = vadd.f32 %v148_v58, %v85_v56  ;;  %v155_v4 = vmax.f32 %v147_v62, 0.0 }
  0xf3   :  { %v150_v59 = vpop.f32.mrf.mxu0 }
  0xf4   :  { %v151_v61 = vadd.f32 %v150_v59, %v81_v57  ;;  %v156_v2 = vmax.f32 %v149_v60, 0.0 }
  0xf5   :  { %v152_v63 = vpop.f32.mrf.mxu0 }
  0xf6   :  { %v153_v0 = vadd.f32 %v152_v63, %v85_v56  ;;  %v157_v1 = vmax.f32 %v151_v61, 0.0 }
  0xf8   :  { %v158_v3 = vmax.f32 %v153_v0, 0.0  ;;  %v159_v6 = vpack.c.bf16 %v157_v1, %v155_v4 }
  0xfa   :  { %v160_v5 = vpack.c.bf16 %v158_v3, %v156_v2 }
  0xfc   :  { %397 = vmatprep.mubr.bf16.mxu1 %v160_v5 }
  0xfd   :  { %398 = vmatmul.mubr.bf16.vlgmr.msra.gmra.mxu1 %v159_v6 }
 0x1bd   :  { %v399_v14 = vpop.f32.mrf.mxu1 }
 0x1be   :  { %v400_v21 = vadd.f32 %v399_v14, %v198_v16 }
 0x1bf   :  { %v401_v17 = vpop.f32.mrf.mxu1 }
 0x1c0   :  { %v402_v19 = vadd.f32 %v401_v17, %v202_v15  ;;  %v408_v27 = vmax.f32 %v400_v21, 0.0 }
 0x1c1   :  { %v403_v18 = vpop.f32.mrf.mxu1 }
 0x1c2   :  { %v404_v20 = vadd.f32 %v403_v18, %v198_v16  ;;  %v409_v25 = vmax.f32 %v402_v19, 0.0 }
 0x1c3   :  { %v405_v22 = vpop.f32.mrf.mxu1 }
 0x1c4   :  { %v406_v23 = vadd.f32 %v405_v22, %v202_v15  ;;  %v410_v24 = vmax.f32 %v404_v20, 0.0 }
 0x1c6   :  { %v411_v26 = vmax.f32 %v406_v23, 0.0  ;;  %v412_v29 = vpack.c.bf16 %v410_v24, %v408_v27 }
 0x1c8   :  { %v413_v28 = vpack.c.bf16 %v411_v26, %v409_v25 }
 0x1ca   :  { %581 = vmatprep.mubr.bf16.mxu0 %v413_v28 }
 0x1cb   :  { %582 = vmatmul.mubr.bf16.vlgmr.msra.gmra.mxu0 %v412_v29 }
 0x28b   :  { %v712_v30 = vpop.f32.mrf.mxu0 }
 0x28d   :  { %v713_v32 = vpop.f32.mrf.mxu0 }
 0x28e   :  { %v714_v33 = vadd.f32 %v713_v32, %v712_v30 }
 0x28f   :  { %v715_v34 = vpop.f32.mrf.mxu0 }
 0x290   :  { %v584_v35 = vadd.f32 %v714_v33, %v670_v31 }
 0x291   :  { %v716_v36 = vpop.f32.mrf.mxu0 }
 0x292   :  { %v594_v37 = vmax.f32 %v584_v35, -20.0  ;;  %v717_v38 = vadd.f32 %v716_v36, %v715_v34  ;;  %797 = vtanh.f32 %v584_v35 }
 0x294   :  { %v596_v39 = vmin.f32 %v594_v37, 2.0  ;;  %v587_v40 = vadd.f32 %v717_v38, %v670_v31 }
 0x296   :  { %v598_v41 = vmul.f32 1.442695, %v596_v39  ;;  %v595_v42 = vmax.f32 %v587_v40, -20.0 }
 0x298   :  { %v597_v43 = vmin.f32 %v595_v42, 2.0  ;;  %799 = vpow2.f32 %v598_v41 }
 0x299   :  { %801 = vtanh.f32 %v587_v40 }
 0x29a   :  { %v600_v44 = vmul.f32 1.442695, %v597_v43 }
 0x29c   :  { %803 = vpow2.f32 %v600_v44 }
 0x29f   :  { %v798_v46 = vpop.eup %797 }
 0x2a5   :  { %v800_v47 = vpop.eup %799 }
 0x2a6   :  { %v802_v48 = vpop.eup %801  ;;  %v603_v51 = vsel %vm602_vm1, %v798_v46, %v800_v47 }
 0x2a9   :  { %v804_v49 = vpop.eup %803 }
 0x2aa   :  { %v604_v52 = vsel %vm602_vm1, %v802_v48, %v804_v49 }
 0x2ab   :  { %v694_v53 = vpack.c.bf16 %v604_v52, %v603_v51 }
 0x2ad   :  { %695 = vst [vmem:[#allocation8] sm:$0xff] %v694_v53  }
 0x2ae   :  { %876 = shalt.err (!%p873_p5)
}
 0x2af   :  { %626 = dma.vmem_to_hbm [thread:$0]  %s621_s24, 128, %s982_s7, [#allocation4], %s896_s3, %s896_s3, %s897_s16  }
 0x2b0   :  { %889 = dma.done.wait [#allocation4], 128  }
 0x2b1   :  { %890 = vsyncadd [#allocation4], 4294967168 }
 0x2b2   :  { %630 = vsyncpa [#allocation3], 1 }
 0x2b3   :  { %631 = vsyncpa [#allocation6], 1 }
 0x2b4   :  { %632 = vsyncpa [#allocation4], 1 }

</bundles_post_ra>
